<compile_context>
chip_gen: v7x
topology: tpu7x:2x2x1
jax: 0.10.0
libtpu: 0.0.40
codegen_flags: <defaults>
</compile_context>

<pallas_src>
import functools

import jax
import jax.numpy as jnp
from jax.experimental import pallas as pl
from jax.experimental.pallas import tpu as pltpu


# ---------------------------------------------------------------------------
# Kernel
# ---------------------------------------------------------------------------
def _fuse_kernel(alpha_ref, v_i_ref, v_c_ref, t_i_ref, t_c_ref,
                 v_out_ref, t_out_ref):
    """Weighted-sum fusion + row-wise L2 norm for both modalities.

    alpha_ref : (1, 1) f32 scalar in SMEM (runtime value, no recompiles).
    Embedding refs are (tile_b, D) tiles in VMEM (native dtype); the last dim
    is the full embed_dim so the reduction never sees padded lanes.
    """
    a = alpha_ref[0, 0]
    one_minus_a = jnp.float32(1.0) - a
    eps = jnp.float32(1e-8)

    def fuse(inst_ref, conc_ref, out_ref):
        # Upcast after the load so HBM traffic stays at the native width.
        inst = inst_ref[...].astype(jnp.float32)
        conc = conc_ref[...].astype(jnp.float32)
        f = a * inst + one_minus_a * conc
        # l2norm along embed_dim; eps placement matches the PyTorch reference
        # (sqrt(sum) + eps, then divide).  Exact divide is free under the DMA
        # bound and keeps tight parity with the reference.
        norm = jnp.sqrt(jnp.sum(f * f, axis=-1, keepdims=True)) + eps
        out_ref[...] = (f / norm).astype(out_ref.dtype)

    fuse(v_i_ref, v_c_ref, v_out_ref)
    fuse(t_i_ref, t_c_ref, t_out_ref)


# ---------------------------------------------------------------------------
# Tiling helpers
# ---------------------------------------------------------------------------
def _round_up(x, m):
    return ((x + m - 1) // m) * m


@functools.lru_cache(maxsize=1)
def _device_kind():
    try:
        return jax.devices()[0].device_kind.lower()
    except Exception:
        return ""


def _is_v7x():
    return "v7" in _device_kind()


def _choose_tile_b(batch, d, in_itemsize, out_itemsize, vmem_budget_bytes,
                   force_two_blocks):
    """Pick a batch tile from a VMEM budget.

    Per grid step the pipeline keeps 4 input tiles + 2 output tiles live, each
    double-buffered, plus ~4 f32 intermediates (upcasts + fused value) that
    Mosaic must hold across the row reduction:
        bytes/row = lanes * (4*2*in + 2*2*out + 4*4)
    where lanes = D rounded up to the 128-lane vreg width.
    """
    sublane = 16 if min(in_itemsize, out_itemsize) < 4 else 8
    lanes = _round_up(d, 128)
    bytes_per_row = lanes * (8 * in_itemsize + 4 * out_itemsize + 16)
    tile = max(sublane, (vmem_budget_bytes // max(bytes_per_row, 1))
               // sublane * sublane)
    tile = min(tile, _round_up(batch, sublane))
    if force_two_blocks and batch >= 2 * sublane:
        # v7x only: expose >= 2 grid blocks so both TensorCores drive HBM.
        half = _round_up(pl.cdiv(batch, 2), sublane)
        tile = min(tile, half)
    return tile, sublane, bytes_per_row


# ---------------------------------------------------------------------------
# Wrapper (== Multi_feature_fusing.forward, fuse_type='weight_sum')
# ---------------------------------------------------------------------------
def multi_feature_fusing_weight_sum(v_emb_instance, t_emb_instance,
                                    v_emb_concept, t_emb_concept,
                                    alpha=0.75, *, tile_b=None,
                                    out_dtype=None,
                                    vmem_budget_bytes=None):
    """Pallas implementation of Multi_feature_fusing.forward ('weight_sum')."""
    B, D = v_emb_instance.shape
    assert t_emb_instance.shape == (B, D)
    assert v_emb_concept.shape == (B, D)
    assert t_emb_concept.shape == (B, D)

    in_dtype = jnp.result_type(v_emb_instance.dtype, t_emb_instance.dtype,
                               v_emb_concept.dtype, t_emb_concept.dtype)
    if out_dtype is None:
        out_dtype = in_dtype  # keep native width on the write-back stream too

    in_itemsize = jnp.dtype(in_dtype).itemsize
    out_itemsize = jnp.dtype(out_dtype).itemsize

    v7x = _is_v7x()
    if vmem_budget_bytes is None:
        # v7x has 64 MiB VMEM per TensorCore; v5e/v6e have 128 MiB physical.
        vmem_budget_bytes = (12 << 20) if v7x else (40 << 20)
    vmem_cap = (32 << 20) if v7x else (64 << 20)

    if tile_b is None:
        tile_b, sublane, bytes_per_row = _choose_tile_b(
            B, D, in_itemsize, out_itemsize, vmem_budget_bytes,
            force_two_blocks=v7x)
    else:
        sublane = 16 if min(in_itemsize, out_itemsize) < 4 else 8
        assert tile_b % sublane == 0, "tile_b must be sublane-aligned"
        bytes_per_row = _round_up(D, 128) * (8 * in_itemsize
                                             + 4 * out_itemsize + 16)

    # Ragged batch: no wrapper-side padding.  The boundary block is masked by
    # Pallas (garbage rows compute garbage, but their stores are dropped and
    # each row's L2 norm only depends on its own lanes).
    grid = (pl.cdiv(B, tile_b),)

    step_bytes = tile_b * bytes_per_row
    vmem_limit = int(min(vmem_cap, max(int(step_bytes * 1.25) + (2 << 20),
                                       16 << 20)))

    alpha_arr = jnp.full((1, 1), alpha, dtype=jnp.float32)
    alpha_spec = pl.BlockSpec(memory_space=pltpu.MemorySpace.SMEM)
    # Last block dim == D (full array dim), so ragged embed_dim needs no
    # padding and the reduction never mixes in padded lanes.
    emb_spec = pl.BlockSpec((tile_b, D), lambda i: (i, 0))

    inputs = tuple(x.astype(in_dtype) for x in (v_emb_instance, v_emb_concept,
                                                t_emb_instance, t_emb_concept))
    out_shapes = (jax.ShapeDtypeStruct((B, D), out_dtype),
                  jax.ShapeDtypeStruct((B, D), out_dtype))

    def _call(dim_semantics):
        fn = pl.pallas_call(
            _fuse_kernel,
            out_shape=out_shapes,
            grid=grid,
            in_specs=[alpha_spec, emb_spec, emb_spec, emb_spec, emb_spec],
            out_specs=(emb_spec, emb_spec),
            compiler_params=pltpu.CompilerParams(
                dimension_semantics=dim_semantics,
                vmem_limit_bytes=vmem_limit),
        )
        return fn(alpha_arr, *inputs)

    # v7x: shard the batch axis across both TensorCores.  v5e/v6e (1 TC):
    # plain "parallel" (harmless) with one big tile.
    if v7x and grid[0] >= 2:
        core_par = getattr(pltpu, "CORE_PARALLEL", None)
        if core_par is not None:
            try:
                return _call((core_par,))
            except Exception:
                pass  # fall back to plain "parallel" below
    return _call(("parallel",))


# ---------------------------------------------------------------------------
# Plain-JAX reference (mirrors the PyTorch 'weight_sum' branch)
# ---------------------------------------------------------------------------
def _reference(v_i, t_i, v_c, t_c, alpha=0.75):
    def l2norm(x, eps=1e-8):
        x = x.astype(jnp.float32)
        n = jnp.sqrt(jnp.sum(x * x, axis=1, keepdims=True)) + eps
        return x / n
    v = l2norm(alpha * v_i.astype(jnp.float32)
               + (1.0 - alpha) * v_c.astype(jnp.float32))
    t = l2norm(alpha * t_i.astype(jnp.float32)
               + (1.0 - alpha) * t_c.astype(jnp.float32))
    return v, t


if __name__ == "__main__":
    key = jax.random.PRNGKey(0)

    # --- test 1: aligned shapes, f32 -------------------------------------
    B, D = 8, 128
    k1, k2, k3, k4, key = jax.random.split(key, 5)
    v_i = jax.random.normal(k1, (B, D), dtype=jnp.float32)
    t_i = jax.random.normal(k2, (B, D), dtype=jnp.float32)
    v_c = jax.random.normal(k3, (B, D), dtype=jnp.float32)
    t_c = jax.random.normal(k4, (B, D), dtype=jnp.float32)

    v_fused, t_fused = multi_feature_fusing_weight_sum(v_i, t_i, v_c, t_c,
                                                       alpha=0.75)
    jax.block_until_ready((v_fused, t_fused))

    v_ref, t_ref = _reference(v_i, t_i, v_c, t_c, alpha=0.75)
    assert v_fused.shape == (B, D) and t_fused.shape == (B, D)
    assert jnp.allclose(v_fused, v_ref, atol=1e-5, rtol=1e-5)
    assert jnp.allclose(t_fused, t_ref, atol=1e-5, rtol=1e-5)

    # --- test 2: ragged shapes, bf16 inputs, runtime alpha ----------------
    # (exercises boundary-block masking on both axes and the SMEM scalar)
    B2, D2 = 10, 200
    k1, k2, k3, k4, key = jax.random.split(key, 5)
    v_i2 = jax.random.normal(k1, (B2, D2), dtype=jnp.bfloat16)
    t_i2 = jax.random.normal(k2, (B2, D2), dtype=jnp.bfloat16)
    v_c2 = jax.random.normal(k3, (B2, D2), dtype=jnp.bfloat16)
    t_c2 = jax.random.normal(k4, (B2, D2), dtype=jnp.bfloat16)

    v_fused2, t_fused2 = multi_feature_fusing_weight_sum(
        v_i2, t_i2, v_c2, t_c2, alpha=0.6)
    jax.block_until_ready((v_fused2, t_fused2))

    v_ref2, t_ref2 = _reference(v_i2, t_i2, v_c2, t_c2, alpha=0.6)
    assert v_fused2.shape == (B2, D2) and t_fused2.shape == (B2, D2)
    assert jnp.allclose(v_fused2.astype(jnp.float32), v_ref2,
                        atol=1e-2, rtol=1e-2)
    assert jnp.allclose(t_fused2.astype(jnp.float32), t_ref2,
                        atol=1e-2, rtol=1e-2)

    # TODO(synk): 'concat' / 'adap_sum' branches of the PyTorch forward
    # reference attributes never created in __init__ and are not runnable in
    # the source; only the default 'weight_sum' path is implemented.

    print("KERNEL_OK")
</pallas_src>

<mosaic_0001>
module attributes {stable_mosaic.version = 11 : i64} {
  func.func @_fuse_kernel(%arg0: i32, %arg1: memref<1x1xf32, #tpu.memory_space<smem>>, %arg2: memref<8x128xf32, #tpu.memory_space<vmem>>, %arg3: memref<8x128xf32, #tpu.memory_space<vmem>>, %arg4: memref<8x128xf32, #tpu.memory_space<vmem>>, %arg5: memref<8x128xf32, #tpu.memory_space<vmem>>, %arg6: memref<8x128xf32, #tpu.memory_space<vmem>>, %arg7: memref<8x128xf32, #tpu.memory_space<vmem>>) attributes {dimension_semantics = [#tpu.dimension_semantics<parallel>], iteration_bounds = array<i64: 1>, scalar_prefetch = 0 : i64, scratch_operands = 0 : i64, tpu.core_type = #tpu.core_type<tc>, window_params = [{transform_indices = @transform_0, window_bounds = array<i64: 1, 1>}, {transform_indices = @transform_1, window_bounds = array<i64: 8, 128>}, {transform_indices = @transform_2, window_bounds = array<i64: 8, 128>}, {transform_indices = @transform_3, window_bounds = array<i64: 8, 128>}, {transform_indices = @transform_4, window_bounds = array<i64: 8, 128>}, {transform_indices = @transform_5, window_bounds = array<i64: 8, 128>}, {transform_indices = @transform_6, window_bounds = array<i64: 8, 128>}]} {
    %c0 = arith.constant 0 : index
    %c0_0 = arith.constant 0 : index
    %0 = memref.load %arg1[%c0, %c0_0] : memref<1x1xf32, #tpu.memory_space<smem>>
    %cst = arith.constant 1.000000e+00 : f32
    %1 = arith.subf %cst, %0 : f32
    %c0_1 = arith.constant 0 : index
    %c0_2 = arith.constant 0 : index
    %2 = vector.load %arg2[%c0_1, %c0_2] : memref<8x128xf32, #tpu.memory_space<vmem>>, vector<8x128xf32>
    %c0_3 = arith.constant 0 : index
    %c0_4 = arith.constant 0 : index
    %3 = vector.load %arg3[%c0_3, %c0_4] : memref<8x128xf32, #tpu.memory_space<vmem>>, vector<8x128xf32>
    %4 = vector.broadcast %0 : f32 to vector<8x128xf32>
    %5 = arith.mulf %4, %2 : vector<8x128xf32>
    %6 = vector.broadcast %1 : f32 to vector<8x128xf32>
    %7 = arith.mulf %6, %3 : vector<8x128xf32>
    %8 = arith.addf %5, %7 : vector<8x128xf32>
    %9 = arith.mulf %8, %8 : vector<8x128xf32>
    %cst_5 = arith.constant dense<0.000000e+00> : vector<8xf32>
    %10 = vector.multi_reduction <add>, %9, %cst_5 [1] : vector<8x128xf32> to vector<8xf32>
    %11 = vector.shape_cast %10 : vector<8xf32> to vector<8x1xf32>
    %12 = math.sqrt %11 : vector<8x1xf32>
    %cst_6 = arith.constant 9.99999993E-9 : f32
    %13 = vector.broadcast %cst_6 : f32 to vector<8x1xf32>
    %14 = arith.addf %12, %13 : vector<8x1xf32>
    %15 = vector.broadcast %14 : vector<8x1xf32> to vector<8x128xf32>
    %16 = arith.divf %8, %15 : vector<8x128xf32>
    %c0_7 = arith.constant 0 : index
    %c0_8 = arith.constant 0 : index
    %17 = vector.load %arg6[%c0_7, %c0_8] : memref<8x128xf32, #tpu.memory_space<vmem>>, vector<8x128xf32>
    tpu.vector_store %arg6[%c0_7, %c0_8], %16 {strides = array<i32>} : memref<8x128xf32, #tpu.memory_space<vmem>>, vector<8x128xf32>,
    %c0_9 = arith.constant 0 : index
    %c0_10 = arith.constant 0 : index
    %18 = vector.load %arg4[%c0_9, %c0_10] : memref<8x128xf32, #tpu.memory_space<vmem>>, vector<8x128xf32>
    %c0_11 = arith.constant 0 : index
    %c0_12 = arith.constant 0 : index
    %19 = vector.load %arg5[%c0_11, %c0_12] : memref<8x128xf32, #tpu.memory_space<vmem>>, vector<8x128xf32>
    %20 = vector.broadcast %0 : f32 to vector<8x128xf32>
    %21 = arith.mulf %20, %18 : vector<8x128xf32>
    %22 = vector.broadcast %1 : f32 to vector<8x128xf32>
    %23 = arith.mulf %22, %19 : vector<8x128xf32>
    %24 = arith.addf %21, %23 : vector<8x128xf32>
    %25 = arith.mulf %24, %24 : vector<8x128xf32>
    %cst_13 = arith.constant dense<0.000000e+00> : vector<8xf32>
    %26 = vector.multi_reduction <add>, %25, %cst_13 [1] : vector<8x128xf32> to vector<8xf32>
    %27 = vector.shape_cast %26 : vector<8xf32> to vector<8x1xf32>
    %28 = math.sqrt %27 : vector<8x1xf32>
    %cst_14 = arith.constant 9.99999993E-9 : f32
    %29 = vector.broadcast %cst_14 : f32 to vector<8x1xf32>
    %30 = arith.addf %28, %29 : vector<8x1xf32>
    %31 = vector.broadcast %30 : vector<8x1xf32> to vector<8x128xf32>
    %32 = arith.divf %24, %31 : vector<8x128xf32>
    %c0_15 = arith.constant 0 : index
    %c0_16 = arith.constant 0 : index
    %33 = vector.load %arg7[%c0_15, %c0_16] : memref<8x128xf32, #tpu.memory_space<vmem>>, vector<8x128xf32>
    tpu.vector_store %arg7[%c0_15, %c0_16], %32 {strides = array<i32>} : memref<8x128xf32, #tpu.memory_space<vmem>>, vector<8x128xf32>,
    return
  }
  func.func @transform_0(%arg0: i32) -> (i32, i32) {
    %c0_i32 = arith.constant 0 : i32
    %c0_i32_0 = arith.constant 0 : i32
    %c0_i32_1 = arith.constant 0 : i32
    return %c0_i32, %c0_i32_0 : i32, i32
  }
  func.func @transform_1(%arg0: i32) -> (i32, i32) {
    %c0_i32 = arith.constant 0 : i32
    %c0_i32_0 = arith.constant 0 : i32
    return %arg0, %c0_i32 : i32, i32
  }
  func.func @transform_2(%arg0: i32) -> (i32, i32) {
    %c0_i32 = arith.constant 0 : i32
    %c0_i32_0 = arith.constant 0 : i32
    return %arg0, %c0_i32 : i32, i32
  }
  func.func @transform_3(%arg0: i32) -> (i32, i32) {
    %c0_i32 = arith.constant 0 : i32
    %c0_i32_0 = arith.constant 0 : i32
    return %arg0, %c0_i32 : i32, i32
  }
  func.func @transform_4(%arg0: i32) -> (i32, i32) {
    %c0_i32 = arith.constant 0 : i32
    %c0_i32_0 = arith.constant 0 : i32
    return %arg0, %c0_i32 : i32, i32
  }
  func.func @transform_5(%arg0: i32) -> (i32, i32) {
    %c0_i32 = arith.constant 0 : i32
    %c0_i32_0 = arith.constant 0 : i32
    return %arg0, %c0_i32 : i32, i32
  }
  func.func @transform_6(%arg0: i32) -> (i32, i32) {
    %c0_i32 = arith.constant 0 : i32
    %c0_i32_0 = arith.constant 0 : i32
    return %arg0, %c0_i32 : i32, i32
  }
}

</mosaic_0001>

<bundles_post_ra>
// kernel: tpu_custom_call.1
= control target key start
LH: loop header
LB: loop body
LE: loop exit
PB: predicated region body
PF: predicated region fallthrough
CT: control target
= control target key end

     0   :  { %13 = vsyncpa [#allocation4], 0  ;;  %s372_s0 = inlined_call_operand.<no memory space> [shape: f32[1,1], index: 0, kind: input, shape index: {}]   ;;  %s373_s1 = inlined_call_operand.hbm [shape: f32[8,128], index: 1, kind: input, shape index: {}]   ;;  %s374_s2 = inlined_call_operand.hbm [shape: f32[8,128], index: 2, kind: input, shape index: {}]   ;;  %s375_s3 = inlined_call_operand.vmem [shape: f32[8,128], index: 3, kind: input, shape index: {}]   ;;  %s376_s4 = inlined_call_operand.hbm [shape: f32[8,128], index: 4, kind: input, shape index: {}]   ;;  %s377_s5 = inlined_call_operand.hbm [shape: f32[8,128], index: 5, kind: output, shape index: {0}]   ;;  %s378_s6 = inlined_call_operand.hbm [shape: f32[8,128], index: 6, kind: output, shape index: {1}]  }
   0x1   :  { %14 = vsyncpa [#allocation7], 0 }
   0x2   :  { %15 = vsyncpa [#allocation5], 0 }
   0x3   :  { %16 = vsyncpa [#allocation11], 0  ;;  %s263_s21 = smov [#allocation6]   ;;  %s264_s23 = smov [#allocation3]  }
   0x4   :  { %s35_s22 = sshll.u32 %s263_s21, 4  ;;  %s25_s24 = sshll.u32 %s264_s23, 4  ;;  %s36_s22 = int_to_ptr.vmem [resolvable:$true] %s35_s22  ;;  %s26_s24 = int_to_ptr.vmem [resolvable:$true] %s25_s24 }
   0x5   :  { %s145_s27 = scalar_lea.hbm %s374_s2, 128 }
   0x6   :  { %p146_p0 = scmp.ne.s32.totalorder %s374_s2, %s145_s27  ;;  %p149_p1 = scmp.lt.u32.totalorder %s145_s27, %s374_s2 }
   0x8   :  { %p151_p2 = pnand %p149_p1, %p146_p0 }
   0xa   :  { %154 = shalt.err (!%p151_p2)
}
   0xb   :  { %s155_s8 = scalar_lea.vmem %s36_s22, 128  ;;  %p160_p4 = scmp.lt.s32.totalorder %s36_s22, %s36_s22 }
   0xc   :  { %p156_p3 = scmp.ne.s32.totalorder %s36_s22, %s155_s8  ;;  %p161_p5 = scmp.lt.s32.totalorder %s155_s8, %s155_s8 }
   0xe   :  { %p162_p6 = por %p161_p5, %p160_p4 }
  0x10   :  { %p163_p7 = pnand %p162_p6, %p156_p3 }
  0x12   :  { %166 = shalt.err (!%p163_p7)
}
  0x13   :  { %38 = dma.hbm_to_vmem [thread:$0]  %s374_s2, 128, %s36_s22, [#allocation7]  }
  0x14   :  { %s167_s13 = scalar_lea.hbm %s373_s1, 128 }
  0x15   :  { %p168_p8 = scmp.ne.s32.totalorder %s373_s1, %s167_s13  ;;  %p171_p9 = scmp.lt.u32.totalorder %s167_s13, %s373_s1 }
  0x17   :  { %p173_p10 = pnand %p171_p9, %p168_p8 }
  0x19   :  { %176 = shalt.err (!%p173_p10)
}
  0x1a   :  { %s177_s18 = scalar_lea.vmem %s26_s24, 128  ;;  %p182_p12 = scmp.lt.s32.totalorder %s26_s24, %s26_s24 }
  0x1b   :  { %p178_p11 = scmp.ne.s32.totalorder %s26_s24, %s177_s18  ;;  %p183_p13 = scmp.lt.s32.totalorder %s177_s18, %s177_s18 }
  0x1d   :  { %p184_p0 = por %p183_p13, %p182_p12 }
  0x1f   :  { %p185_p1 = pnand %p184_p0, %p178_p11 }
  0x21   :  { %188 = shalt.err (!%p185_p1)
}
  0x22   :  { %28 = dma.hbm_to_vmem [thread:$0]  %s373_s1, 128, %s26_s24, [#allocation4]  }
  0x23   :  { %s265_s20 = smov [#allocation8]   ;;  %s189_s25 = scalar_lea.hbm %s376_s4, 128 }
  0x24   :  { %s47_s21 = sshll.u32 %s265_s20, 4  ;;  %p190_p2 = scmp.ne.s32.totalorder %s376_s4, %s189_s25  ;;  %s48_s21 = int_to_ptr.vmem [resolvable:$true] %s47_s21 }
  0x25   :  { %p193_p3 = scmp.lt.u32.totalorder %s189_s25, %s376_s4 }
  0x27   :  { %p195_p4 = pnand %p193_p3, %p190_p2 }
  0x29   :  { %198 = shalt.err (!%p195_p4)
}
  0x2a   :  { %s199_s30 = scalar_lea.vmem %s48_s21, 128  ;;  %p204_p6 = scmp.lt.s32.totalorder %s48_s21, %s48_s21 }
  0x2b   :  { %p200_p5 = scmp.ne.s32.totalorder %s48_s21, %s199_s30  ;;  %p205_p7 = scmp.lt.s32.totalorder %s199_s30, %s199_s30 }
  0x2d   :  { %p206_p8 = por %p205_p7, %p204_p6 }
  0x2f   :  { %p207_p9 = pnand %p206_p8, %p200_p5 }
  0x31   :  { %210 = shalt.err (!%p207_p9)
}
  0x32   :  { %50 = dma.hbm_to_vmem [thread:$0]  %s376_s4, 128, %s48_s21, [#allocation7]  }
  0x33   :  { %255 = dma.done.wait [#allocation4], 128  }
  0x34   :  { %256 = vsyncadd [#allocation4], 4294967168 }
  0x35   :  { %257 = dma.done.wait [#allocation7], 256  }
  0x36   :  { %258 = vsyncadd [#allocation7], 4294967040  ;;  %s61_s9 = ssub.f32 1.0, %s372_s0  ;;  %v64_v0 = vstv %s372_s0  ;;  %v62_v2 = vld [vmem:[#allocation3] sm:$0xff]  ;;  %v63_v3 = vld [vmem:[#allocation6] sm:$0xff]  ;;  %s266_s0 = smov [#allocation9]  }
  0x37   :  { %v83_v4 = vld [vmem:[%s375_s3] sm:$0xff]  ;;  %v65_v5 = vmul.f32 %v64_v0, %v62_v2  ;;  %v84_v7 = vld [vmem:[#allocation8] sm:$0xff]  ;;  %s108_s3 = sshll.u32 %s266_s0, 4  ;;  %s267_s4 = smov [#allocation10]   ;;  %s109_s3 = int_to_ptr.vmem [resolvable:$true] %s108_s3 }
  0x38   :  { %v66_v1 = vstv %s61_s9  ;;  %v85_v8 = vmul.f32 %v83_v4, %v64_v0  ;;  %s118_s14 = sshll.u32 %s267_s4, 4  ;;  %s211_s15 = scalar_lea.vmem %s109_s3, 128  ;;  %s119_s14 = int_to_ptr.vmem [resolvable:$true] %s118_s14 }
  0x39   :  { %v67_v6 = vmul.f32 %v66_v1, %v63_v3  ;;  %v86_v9 = vmul.f32 %v84_v7, %v66_v1  ;;  %p212_p10 = scmp.ne.s32.totalorder %s109_s3, %s211_s15  ;;  %p216_p11 = scmp.lt.s32.totalorder %s109_s3, %s109_s3 }
  0x3a   :  { %p217_p12 = scmp.lt.s32.totalorder %s211_s15, %s211_s15 }
  0x3b   :  { %v68_v10 = vadd.f32 %v67_v6, %v65_v5  ;;  %v87_v11 = vadd.f32 %v86_v9, %v85_v8 }
  0x3c   :  { %p218_p13 = por %p217_p12, %p216_p11 }
  0x3d   :  { %v69_v12 = vmul.f32 %v68_v10, %v68_v10  ;;  %v88_v13 = vmul.f32 %v87_v11, %v87_v11 }
  0x3e   :  { %p219_p0 = pnand %p218_p13, %p212_p10 }
  0x3f   :  { %70 = vadd.xlane.f32.xlu0 %v69_v12 }
  0x43   :  { %89 = vadd.xlane.f32.xlu0 %v88_v13 }
  0xcc   :  { %v71_v14 = vpop.xlane.xlu0 %70 }
  0xcd   :  { %137 = vrsqrt.f32 %v71_v14  ;;  %vm74_vm0 = vcmp.eq.f32.partialorder %v71_v14, inf  ;;  %v77_v18 = vand.u32 2147483648, %v71_v14  ;;  %vm76_vm1 = vcmp.eq.f32.partialorder %v71_v14, 0.0 }
  0xd0   :  { %v90_v15 = vpop.xlane.xlu0 %89 }
  0xd1   :  { %139 = vrsqrt.f32 %v90_v15  ;;  %vm93_vm2 = vcmp.eq.f32.partialorder %v90_v15, inf  ;;  %v96_v24 = vand.u32 2147483648, %v90_v15  ;;  %vm95_vm3 = vcmp.eq.f32.partialorder %v90_v15, 0.0 }
  0xd7   :  { %v138_v16 = vpop.eup %137 }
  0xd8   :  { %v73_v17 = vmul.f32 %v138_v16, %v71_v14 }
  0xda   :  { %v75_v19 = vsel %vm74_vm0, %v71_v14, %v73_v17 }
  0xdb   :  { %v140_v20 = vpop.eup %139  ;;  %v78_v21 = vsel %vm76_vm1, %v77_v18, %v75_v19 }
  0xdc   :  { %v79_v22 = vadd.f32 1e-08, %v78_v21  ;;  %v92_v23 = vmul.f32 %v140_v20, %v90_v15 }
  0xde   :  { %v94_v25 = vsel %vm93_vm2, %v90_v15, %v92_v23  ;;  %141 = vrcp.f32 %v79_v22 }
  0xdf   :  { %v97_v26 = vsel %vm95_vm3, %v96_v24, %v94_v25 }
  0xe0   :  { %v98_v27 = vadd.f32 1e-08, %v97_v26 }
  0xe2   :  { %143 = vrcp.f32 %v98_v27 }
  0xe8   :  { %v142_v28 = vpop.eup %141 }
  0xe9   :  { %v81_v29 = vmul.f32 %v142_v28, %v68_v10 }
  0xeb   :  { %82 = vst [vmem:[#allocation9] sm:$0xff] %v81_v29 }
  0xec   :  { %v144_v30 = vpop.eup %143 }
  0xed   :  { %222 = shalt.err (!%p219_p0)
}
  0xee   :  { %s223_s18 = scalar_lea.hbm %s377_s5, 128 }
  0xef   :  { %p224_p1 = scmp.ne.s32.totalorder %s377_s5, %s223_s18  ;;  %p227_p2 = scmp.lt.u32.totalorder %s223_s18, %s377_s5 }
  0xf1   :  { %p229_p3 = pnand %p227_p2, %p224_p1 }
  0xf3   :  { %232 = shalt.err (!%p229_p3)
}
  0xf4   :  { %111 = dma.vmem_to_hbm [thread:$0]  %s109_s3, 128, %s377_s5, [#allocation5]   ;;  %v100_v31 = vmul.f32 %v144_v30, %v87_v11 }
  0xf5   :  { %s233_s25 = scalar_lea.vmem %s119_s14, 128  ;;  %p238_p5 = scmp.lt.s32.totalorder %s119_s14, %s119_s14 }
  0xf6   :  { %101 = vst [vmem:[#allocation10] sm:$0xff] %v100_v31  ;;  %p234_p4 = scmp.ne.s32.totalorder %s119_s14, %s233_s25  ;;  %p239_p6 = scmp.lt.s32.totalorder %s233_s25, %s233_s25 }
  0xf8   :  { %p240_p7 = por %p239_p6, %p238_p5 }
  0xfa   :  { %p241_p8 = pnand %p240_p7, %p234_p4 }
  0xfc   :  { %244 = shalt.err (!%p241_p8)
}
  0xfd   :  { %s245_s28 = scalar_lea.hbm %s378_s6, 128 }
  0xfe   :  { %p246_p9 = scmp.ne.s32.totalorder %s378_s6, %s245_s28  ;;  %p249_p10 = scmp.lt.u32.totalorder %s245_s28, %s378_s6 }
 0x100   :  { %p251_p11 = pnand %p249_p10, %p246_p9 }
 0x102   :  { %254 = shalt.err (!%p251_p11)
}
 0x103   :  { %121 = dma.vmem_to_hbm [thread:$0]  %s119_s14, 128, %s378_s6, [#allocation11]  }
 0x104   :  { %259 = dma.done.wait [#allocation5], 128  }
 0x105   :  { %260 = vsyncadd [#allocation5], 4294967168 }
 0x106   :  { %261 = dma.done.wait [#allocation11], 128  }
 0x107   :  { %262 = vsyncadd [#allocation11], 4294967168 }
 0x108   :  { %128 = vsyncpa [#allocation4], 1 }
 0x109   :  { %129 = vsyncpa [#allocation7], 1 }
 0x10a   :  { %130 = vsyncpa [#allocation5], 1 }
 0x10b   :  { %131 = vsyncpa [#allocation11], 1 }

</bundles_post_ra>
